<compile_context>
chip_gen: v5e
topology: v5e:2x2
jax: 0.10.0
libtpu: 0.0.40
codegen_flags: <defaults>
</compile_context>

<pallas_src>
import functools

import jax
import jax.numpy as jnp
from jax.experimental import pallas as pl
from jax.experimental.pallas import tpu as pltpu

_LANE = 128
_SUBLANE = 8
_NEG_INF = -1e30  # large-negative mask; exp() underflows to exactly 0.0 in f32


def _round_up(n, m):
    return ((n + m - 1) // m) * m


def _tpu_generation():
    """Best-effort TPU generation from device_kind; 0 if unknown."""
    try:
        kind = jax.devices()[0].device_kind.lower()
        for g in range(9, 3, -1):
            if f"v{g}" in kind or f"tpu{g}" in kind:
                return g
    except Exception:
        pass
    return 0


def _vmem_budget_bytes():
    """Per-chip VMEM budget passed as vmem_limit_bytes (review item)."""
    cap = None
    try:
        cap = int(pltpu.get_tpu_info().vmem_capacity_bytes)
    except Exception:
        cap = None
    gen = _tpu_generation()
    if cap is None:
        cap = 64 * 1024 * 1024 if gen >= 7 else 128 * 1024 * 1024
    if gen >= 7 or cap <= 64 * 1024 * 1024:   # v7x: 64 MiB per TensorCore
        return 48 * 1024 * 1024
    if gen == 6:                              # v6e: 128 MiB physical VMEM
        return 96 * 1024 * 1024
    return 64 * 1024 * 1024                   # v5e / older / unknown: stay modest


def _mxu_dtype():
    # bf16 MXU operands (f32 accumulation) on v6e/v7x; f32 elsewhere.
    return jnp.bfloat16 if _tpu_generation() >= 6 else jnp.float32


def _choose_block_b(B, Lp, Ep, Dp, Ap, mxu_itemsize, vmem_budget_bytes):
    """Largest batch tile whose working set fits the budget.

    Subtracts the VMEM-resident parameter footprint (counted double-buffered in
    case single-buffering is not honoured), keeps the tile sublane-aligned
    without silently exceeding the budget (the chip-derived vmem_limit_bytes is
    the hard cap), and caps it so the grid has >= 2 steps when B >= 16 so both
    v7x TensorCores get work under dimension_semantics=("parallel",)."""
    param_bytes = 2 * (mxu_itemsize * Dp * Ap + 4 * (2 * Ap + _SUBLANE * _LANE))
    per_row = (2 * (mxu_itemsize * Lp * Ep            # feature tile (double-buffered)
                    + 4 * Lp * Ap                     # u_hs tile
                    + mxu_itemsize * Dp               # hidden tile
                    + 4 * (Lp + Ep))                  # alpha / context output tiles
               + 2 * 4 * Lp * Ap)                     # tanh / combined f32 temporaries
    avail = max(int(vmem_budget_bytes) - param_bytes, per_row)
    bb = max(1, avail // per_row)
    if bb >= B:
        bb = B
    elif bb >= _SUBLANE:
        bb = (bb // _SUBLANE) * _SUBLANE              # sublane-aligned, still <= budget
    else:
        bb = _SUBLANE                                 # forced floor; vmem_limit has headroom
    if B >= 2 * _SUBLANE:
        bb = min(bb, _round_up(pl.cdiv(B, 2), _SUBLANE))
    return int(bb)


def prepare_attention_inputs(features, params, *, mxu_dtype=None):
    """One-time, per-image preparation (run OUTSIDE the decode loop).

    * Pads features to (B, Lp, Ep): Lp only to the 8-sublane granularity,
      Ep to a 128-lane multiple, and casts the MXU-operand copy.
    * Precomputes u_hs = features @ U_w + U_b (hidden-state independent), so
      the dominant (B*L, E)@(E, A) matmul is not redone every decode step.
    * Pads / casts the decoder-side attention parameters (W, A).

    PyTorch nn.Linear weights must be passed transposed, i.e. (in, out).
    """
    if mxu_dtype is None:
        mxu_dtype = _mxu_dtype()
    f32 = jnp.float32
    B, L, E = features.shape
    D = params["W_w"].shape[0]
    A = params["U_w"].shape[1]
    Lp = _round_up(L, _SUBLANE)
    Ep, Dp, Ap = (_round_up(x, _LANE) for x in (E, D, A))

    feat_f32 = jnp.pad(features.astype(f32), ((0, 0), (0, Lp - L), (0, Ep - E)))
    uw = jnp.pad(params["U_w"].astype(f32), ((0, Ep - E), (0, Ap - A)))
    ub = jnp.pad(params["U_b"].astype(f32).reshape(1, -1), ((0, 0), (0, Ap - A)))
    # Hidden-independent projection, computed once per image in f32.
    u_hs = jnp.einsum("ble,ea->bla", feat_f32, uw) + ub

    return {
        "feat": feat_f32.astype(mxu_dtype),                 # context / MXU operand
        "u_hs": u_hs.astype(f32),                           # tanh input, keep f32
        "W_w": jnp.pad(params["W_w"].astype(f32),
                       ((0, Dp - D), (0, Ap - A))).astype(mxu_dtype),
        "W_b": jnp.pad(params["W_b"].astype(f32).reshape(1, -1), ((0, 0), (0, Ap - A))),
        "A_w": jnp.pad(params["A_w"].astype(f32).reshape(1, -1), ((0, 0), (0, Ap - A))),
        "A_b": params["A_b"].astype(f32).reshape(1, 1),
        "dims": (B, L, E, D, A, Lp, Ep, Dp, Ap),
        "mxu_dtype": mxu_dtype,
    }


def _attention_kernel(feat_ref, u_hs_ref, hid_ref, ww_ref, wb_ref, aw_ref,
                      ab_ref, alpha_ref, ctx_ref, *, num_valid):
    bb, Lp, _ = feat_ref.shape
    Ap = ww_ref.shape[1]

    # w_ah = W(hidden_state): (bb, Dp) @ (Dp, Ap), f32 accumulation on the MXU.
    w_ah = jnp.dot(hid_ref[...], ww_ref[...],
                   preferred_element_type=jnp.float32) + wb_ref[...]        # (bb, Ap)

    # combined = tanh(U(features) + W(hidden)); U(features) is precomputed.
    combined = jnp.tanh(u_hs_ref[...] + w_ah[:, None, :])                   # (bb, Lp, Ap) f32

    # attention_scores = A(combined).squeeze(2): VPU multiply + lane reduce,
    # producing (bb, Lp) directly (no degenerate N=1 MXU matmul / relayout).
    scores = jnp.sum(combined * aw_ref[...].reshape(1, 1, Ap), axis=-1) + ab_ref[...]

    if num_valid != Lp:
        # Zero-padded spatial positions must get exactly zero attention weight.
        valid = jax.lax.broadcasted_iota(jnp.int32, (bb, Lp), 1) < num_valid
        scores = jnp.where(valid, scores, _NEG_INF)

    # softmax over L in f32; exact divide so alpha rows sum to 1.
    m = jnp.max(scores, axis=1, keepdims=True)
    e = jnp.exp(scores - m)
    alpha = e / jnp.sum(e, axis=1, keepdims=True)
    alpha_ref[...] = alpha.astype(alpha_ref.dtype)

    # context[b, :] = sum_l alpha[b, l] * feat[b, l, :] — batched MXU
    # contraction (rank-3 'bql,ble->bqe' with q=1, f32 accumulation).
    ctx = jnp.einsum("bql,ble->bqe", alpha.astype(feat_ref.dtype)[:, None, :],
                     feat_ref[...], preferred_element_type=jnp.float32)
    ctx_ref[...] = ctx[:, 0, :].astype(ctx_ref.dtype)


def attention_step(prepped, hidden_state, *, vmem_budget_bytes=None):
    """One decode-step of soft attention.  Returns (alpha (B, L), context (B, E))."""
    B, L, E, D, A, Lp, Ep, Dp, Ap = prepped["dims"]
    mxu_dtype = prepped["mxu_dtype"]
    mxu_itemsize = 2 if mxu_dtype == jnp.bfloat16 else 4
    f32 = jnp.float32

    if vmem_budget_bytes is None:
        vmem_budget_bytes = _vmem_budget_bytes()

    # Per-step padding only touches the tiny (B, D) hidden state.
    hid_p = jnp.pad(hidden_state.astype(f32), ((0, 0), (0, Dp - D))).astype(mxu_dtype)

    block_b = _choose_block_b(B, Lp, Ep, Dp, Ap, mxu_itemsize, vmem_budget_bytes)
    n_b = pl.cdiv(B, block_b)
    # NB: if B % block_b != 0 the ragged last tile computes on undefined padded
    # rows; tanh bounds those scores so valid rows cannot be contaminated, and
    # the extra rows never land in the returned (B, .) slices.

    flops = (2 * B * Dp * Ap          # W(hidden)
             + 2 * B * Lp * Ap        # score contraction
             + 2 * B * Lp * Ep)       # context
    transcendentals = B * Lp * Ap + B * Lp      # tanh + exp
    bytes_accessed = (mxu_itemsize * (B * Lp * Ep + B * Dp + Dp * Ap)
                      + 4 * (B * Lp * Ap + 3 * Ap + 1 + B * Lp + B * Ep))

    kernel = functools.partial(_attention_kernel, num_valid=L)
    out_shape = (jax.ShapeDtypeStruct((B, Lp), f32),
                 jax.ShapeDtypeStruct((B, Ep), f32))

    def run(param_mode):
        def const2d(shape):
            kwargs = {} if param_mode is None else {"pipeline_mode": param_mode}
            return pl.BlockSpec(shape, lambda i: (0, 0), **kwargs)

        grid_spec = pltpu.PrefetchScalarGridSpec(
            num_scalar_prefetch=0,
            grid=(n_b,),
            in_specs=[
                pl.BlockSpec((block_b, Lp, Ep), lambda i: (i, 0, 0)),   # features
                pl.BlockSpec((block_b, Lp, Ap), lambda i: (i, 0, 0)),   # u_hs (precomputed)
                pl.BlockSpec((block_b, Dp),     lambda i: (i, 0)),      # hidden_state
                const2d((Dp, Ap)),                                      # W weight
                const2d((1, Ap)),                                       # W bias
                const2d((1, Ap)),                                       # A weight (row vec)
                const2d((1, 1)),                                        # A bias
            ],
            out_specs=[
                pl.BlockSpec((block_b, Lp), lambda i: (i, 0)),          # alpha
                pl.BlockSpec((block_b, Ep), lambda i: (i, 0)),          # context
            ],
        )
        return pl.pallas_call(
            kernel,
            out_shape=out_shape,
            grid_spec=grid_spec,
            compiler_params=pltpu.CompilerParams(
                dimension_semantics=("parallel",),
                vmem_limit_bytes=int(vmem_budget_bytes)),
            cost_estimate=pl.CostEstimate(flops=flops,
                                          transcendentals=transcendentals,
                                          bytes_accessed=bytes_accessed),
        )(prepped["feat"], prepped["u_hs"], hid_p,
          prepped["W_w"], prepped["W_b"], prepped["A_w"], prepped["A_b"])

    # Single-buffer the grid-constant parameters (reclaims ~half their VMEM);
    # fall back to the default double-buffered pipeline if this JAX version
    # does not accept pipeline_mode / Buffered(1).
    buffered = getattr(pl, "Buffered", None)
    try:
        alpha_p, ctx_p = run(buffered(1) if buffered is not None else None)
    except Exception:
        alpha_p, ctx_p = run(None)

    return alpha_p[:, :L], ctx_p[:, :E]


def attention_forward(features, hidden_state, params, **kwargs):
    """Convenience: per-image prepare + one attention step."""
    prepped = prepare_attention_inputs(features, params)
    return attention_step(prepped, hidden_state, **kwargs)


def _reference(features, hidden_state, params):
    u_hs = features @ params["U_w"] + params["U_b"][0]
    w_ah = hidden_state @ params["W_w"] + params["W_b"][0]
    combined = jnp.tanh(u_hs + w_ah[:, None, :])
    scores = (combined @ params["A_w"])[..., 0] + params["A_b"][0, 0]
    alpha = jax.nn.softmax(scores, axis=1)
    ctx = jnp.sum(features * alpha[:, :, None], axis=1)
    return alpha, ctx


if __name__ == "__main__":
    # Small deterministic problem: B=2 images, L=16 spatial locations (4x4
    # feature map), encoder_dim=32, decoder_dim=48, attention_dim=64.
    B, L, E, D, A = 2, 16, 32, 48, 64

    key = jax.random.PRNGKey(0)
    k_feat, k_hid, k_uw, k_ub, k_ww, k_wb, k_aw, k_ab = jax.random.split(key, 8)

    features = jax.random.normal(k_feat, (B, L, E), dtype=jnp.float32)
    hidden_state = jax.random.normal(k_hid, (B, D), dtype=jnp.float32)

    params = {
        "U_w": jax.random.normal(k_uw, (E, A), dtype=jnp.float32) * 0.1,
        "U_b": jax.random.normal(k_ub, (1, A), dtype=jnp.float32) * 0.1,
        "W_w": jax.random.normal(k_ww, (D, A), dtype=jnp.float32) * 0.1,
        "W_b": jax.random.normal(k_wb, (1, A), dtype=jnp.float32) * 0.1,
        "A_w": jax.random.normal(k_aw, (A, 1), dtype=jnp.float32) * 0.1,
        "A_b": jax.random.normal(k_ab, (1, 1), dtype=jnp.float32) * 0.1,
    }

    # One-time per-image preparation (padding + U(features) projection), then a
    # short "decode loop" that reuses it: the per-step kernel never re-pads or
    # re-projects the features.
    prepped = prepare_attention_inputs(features, params)

    # bf16 MXU operands on v6e/v7x need a looser tolerance; pure-f32 path is tight.
    tol = 4e-2 if prepped["mxu_dtype"] == jnp.bfloat16 else 1e-4

    for step in range(3):
        hid = hidden_state * (1.0 + 0.25 * step)
        alpha, ctx = attention_step(prepped, hid)
        jax.block_until_ready((alpha, ctx))

        alpha_ref, ctx_ref = _reference(features, hid, params)
        assert alpha.shape == (B, L) and ctx.shape == (B, E)
        assert jnp.allclose(alpha, alpha_ref, atol=tol, rtol=tol), f"alpha step {step}"
        assert jnp.allclose(ctx, ctx_ref, atol=tol, rtol=tol), f"ctx step {step}"
        # Exact softmax divide: rows sum to 1.
        assert jnp.allclose(jnp.sum(alpha, axis=1), 1.0, atol=1e-4)

    print("KERNEL_OK")
</pallas_src>

<mosaic_0001>
module attributes {stable_mosaic.version = 11 : i64} {
  func.func @_attention_kernel(%arg0: i32, %arg1: memref<2x16x128xf32, #tpu.memory_space<vmem>>, %arg2: memref<2x16x128xf32, #tpu.memory_space<vmem>>, %arg3: memref<2x128xf32, #tpu.memory_space<vmem>>, %arg4: memref<128x128xf32, #tpu.memory_space<vmem>>, %arg5: memref<1x128xf32, #tpu.memory_space<vmem>>, %arg6: memref<1x128xf32, #tpu.memory_space<vmem>>, %arg7: memref<1x1xf32, #tpu.memory_space<vmem>>, %arg8: memref<2x16xf32, #tpu.memory_space<vmem>>, %arg9: memref<2x128xf32, #tpu.memory_space<vmem>>) attributes {dimension_semantics = [#tpu.dimension_semantics<parallel>], iteration_bounds = array<i64: 1>, scalar_prefetch = 0 : i64, scratch_operands = 0 : i64, tpu.core_type = #tpu.core_type<tc>, window_params = [{transform_indices = @transform_0, window_bounds = array<i64: 2, 16, 128>}, {transform_indices = @transform_1, window_bounds = array<i64: 2, 16, 128>}, {transform_indices = @transform_2, window_bounds = array<i64: 2, 128>}, {pipeline_mode = #tpu.pipeline_mode<synchronous>, transform_indices = @transform_3, window_bounds = array<i64: 128, 128>}, {pipeline_mode = #tpu.pipeline_mode<synchronous>, transform_indices = @transform_4, window_bounds = array<i64: 1, 128>}, {pipeline_mode = #tpu.pipeline_mode<synchronous>, transform_indices = @transform_5, window_bounds = array<i64: 1, 128>}, {pipeline_mode = #tpu.pipeline_mode<synchronous>, transform_indices = @transform_6, window_bounds = array<i64: 1, 1>}, {transform_indices = @transform_7, window_bounds = array<i64: 2, 16>}, {transform_indices = @transform_8, window_bounds = array<i64: 2, 128>}]} {
    %c0 = arith.constant 0 : index
    %c0_0 = arith.constant 0 : index
    %0 = vector.load %arg3[%c0, %c0_0] : memref<2x128xf32, #tpu.memory_space<vmem>>, vector<2x128xf32>
    %c0_1 = arith.constant 0 : index
    %c0_2 = arith.constant 0 : index
    %1 = vector.load %arg4[%c0_1, %c0_2] : memref<128x128xf32, #tpu.memory_space<vmem>>, vector<128x128xf32>
    %cst = arith.constant dense<0.000000e+00> : vector<2x128xf32>
    %2 = tpu.matmul %0, %1, %cst {dimension_numbers = #tpu.dot_dimension_numbers<[1], [0], [0], [1], [0, 0, 1, 1], [], []>} : vector<2x128xf32>, vector<128x128xf32>, vector<2x128xf32> -> vector<2x128xf32>
    %c0_3 = arith.constant 0 : index
    %c0_4 = arith.constant 0 : index
    %3 = vector.load %arg5[%c0_3, %c0_4] : memref<1x128xf32, #tpu.memory_space<vmem>>, vector<1x128xf32>
    %4 = vector.broadcast %3 : vector<1x128xf32> to vector<2x128xf32>
    %5 = arith.addf %2, %4 : vector<2x128xf32>
    %c0_5 = arith.constant 0 : index
    %c0_6 = arith.constant 0 : index
    %c0_7 = arith.constant 0 : index
    %6 = vector.load %arg2[%c0_5, %c0_6, %c0_7] : memref<2x16x128xf32, #tpu.memory_space<vmem>>, vector<2x16x128xf32>
    %7 = vector.shape_cast %5 : vector<2x128xf32> to vector<2x1x128xf32>
    %8 = vector.broadcast %7 : vector<2x1x128xf32> to vector<2x16x128xf32>
    %9 = arith.addf %6, %8 : vector<2x16x128xf32>
    %10 = math.tanh %9 : vector<2x16x128xf32>
    %c0_8 = arith.constant 0 : index
    %c0_9 = arith.constant 0 : index
    %11 = vector.load %arg6[%c0_8, %c0_9] : memref<1x128xf32, #tpu.memory_space<vmem>>, vector<1x128xf32>
    %12 = vector.shape_cast %11 : vector<1x128xf32> to vector<1x1x128xf32>
    %13 = vector.broadcast %12 : vector<1x1x128xf32> to vector<2x16x128xf32>
    %14 = arith.mulf %10, %13 : vector<2x16x128xf32>
    %cst_10 = arith.constant dense<0.000000e+00> : vector<2x16xf32>
    %15 = vector.multi_reduction <add>, %14, %cst_10 [2] : vector<2x16x128xf32> to vector<2x16xf32>
    %c0_11 = arith.constant 0 : index
    %c0_12 = arith.constant 0 : index
    %16 = vector.load %arg7[%c0_11, %c0_12] : memref<1x1xf32, #tpu.memory_space<vmem>>, vector<1x1xf32>
    %17 = vector.broadcast %16 : vector<1x1xf32> to vector<2x16xf32>
    %18 = arith.addf %15, %17 : vector<2x16xf32>
    %cst_13 = arith.constant dense<0xFF800000> : vector<2xf32>
    %19 = vector.multi_reduction <maximumf>, %18, %cst_13 [1] : vector<2x16xf32> to vector<2xf32>
    %20 = vector.shape_cast %19 : vector<2xf32> to vector<2x1xf32>
    %21 = vector.broadcast %20 : vector<2x1xf32> to vector<2x16xf32>
    %22 = arith.subf %18, %21 : vector<2x16xf32>
    %23 = math.exp %22 : vector<2x16xf32>
    %cst_14 = arith.constant dense<0.000000e+00> : vector<2xf32>
    %24 = vector.multi_reduction <add>, %23, %cst_14 [1] : vector<2x16xf32> to vector<2xf32>
    %25 = vector.shape_cast %24 : vector<2xf32> to vector<2x1xf32>
    %26 = vector.broadcast %25 : vector<2x1xf32> to vector<2x16xf32>
    %27 = arith.divf %23, %26 : vector<2x16xf32>
    %c0_15 = arith.constant 0 : index
    %c0_16 = arith.constant 0 : index
    %28 = vector.load %arg8[%c0_15, %c0_16] : memref<2x16xf32, #tpu.memory_space<vmem>>, vector<2x16xf32>
    tpu.vector_store %arg8[%c0_15, %c0_16], %27 {strides = array<i32>} : memref<2x16xf32, #tpu.memory_space<vmem>>, vector<2x16xf32>,
    %29 = vector.shape_cast %27 : vector<2x16xf32> to vector<2x1x16xf32>
    %c0_17 = arith.constant 0 : index
    %c0_18 = arith.constant 0 : index
    %c0_19 = arith.constant 0 : index
    %30 = vector.load %arg1[%c0_17, %c0_18, %c0_19] : memref<2x16x128xf32, #tpu.memory_space<vmem>>, vector<2x16x128xf32>
    "tpu.trace_start"() <{level = 10 : i32, message = "bql,ble->bqe"}> : () -> ()
    %cst_20 = arith.constant dense<0.000000e+00> : vector<2x1x128xf32>
    %31 = tpu.matmul %29, %30, %cst_20 {dimension_numbers = #tpu.dot_dimension_numbers<[2], [1], [1], [2], [0, 0, 0, 1, 1, 2], [0], [0]>} : vector<2x1x16xf32>, vector<2x16x128xf32>, vector<2x1x128xf32> -> vector<2x1x128xf32>
    "tpu.trace_stop"() : () -> ()
    %32 = vector.shape_cast %31 : vector<2x1x128xf32> to vector<2x128xf32>
    %c0_21 = arith.constant 0 : index
    %c0_22 = arith.constant 0 : index
    %33 = vector.load %arg9[%c0_21, %c0_22] : memref<2x128xf32, #tpu.memory_space<vmem>>, vector<2x128xf32>
    tpu.vector_store %arg9[%c0_21, %c0_22], %32 {strides = array<i32>} : memref<2x128xf32, #tpu.memory_space<vmem>>, vector<2x128xf32>,
    return
  }
  func.func @transform_0(%arg0: i32) -> (i32, i32, i32) {
    %c0_i32 = arith.constant 0 : i32
    %c0_i32_0 = arith.constant 0 : i32
    %c0_i32_1 = arith.constant 0 : i32
    return %arg0, %c0_i32, %c0_i32_0 : i32, i32, i32
  }
  func.func @transform_1(%arg0: i32) -> (i32, i32, i32) {
    %c0_i32 = arith.constant 0 : i32
    %c0_i32_0 = arith.constant 0 : i32
    %c0_i32_1 = arith.constant 0 : i32
    return %arg0, %c0_i32, %c0_i32_0 : i32, i32, i32
  }
  func.func @transform_2(%arg0: i32) -> (i32, i32) {
    %c0_i32 = arith.constant 0 : i32
    %c0_i32_0 = arith.constant 0 : i32
    return %arg0, %c0_i32 : i32, i32
  }
  func.func @transform_3(%arg0: i32) -> (i32, i32) {
    %c0_i32 = arith.constant 0 : i32
    %c0_i32_0 = arith.constant 0 : i32
    %c0_i32_1 = arith.constant 0 : i32
    return %c0_i32, %c0_i32_0 : i32, i32
  }
  func.func @transform_4(%arg0: i32) -> (i32, i32) {
    %c0_i32 = arith.constant 0 : i32
    %c0_i32_0 = arith.constant 0 : i32
    %c0_i32_1 = arith.constant 0 : i32
    return %c0_i32, %c0_i32_0 : i32, i32
  }
  func.func @transform_5(%arg0: i32) -> (i32, i32) {
    %c0_i32 = arith.constant 0 : i32
    %c0_i32_0 = arith.constant 0 : i32
    %c0_i32_1 = arith.constant 0 : i32
    return %c0_i32, %c0_i32_0 : i32, i32
  }
  func.func @transform_6(%arg0: i32) -> (i32, i32) {
    %c0_i32 = arith.constant 0 : i32
    %c0_i32_0 = arith.constant 0 : i32
    %c0_i32_1 = arith.constant 0 : i32
    return %c0_i32, %c0_i32_0 : i32, i32
  }
  func.func @transform_7(%arg0: i32) -> (i32, i32) {
    %c0_i32 = arith.constant 0 : i32
    %c0_i32_0 = arith.constant 0 : i32
    return %arg0, %c0_i32 : i32, i32
  }
  func.func @transform_8(%arg0: i32) -> (i32, i32) {
    %c0_i32 = arith.constant 0 : i32
    %c0_i32_0 = arith.constant 0 : i32
    return %arg0, %c0_i32 : i32, i32
  }
}

module attributes {stable_mosaic.version = 11 : i64} {
  func.func @_attention_kernel(%arg0: i32, %arg1: memref<2x16x128xf32, #tpu.memory_space<vmem>>, %arg2: memref<2x16x128xf32, #tpu.memory_space<vmem>>, %arg3: memref<2x128xf32, #tpu.memory_space<vmem>>, %arg4: memref<128x128xf32, #tpu.memory_space<vmem>>, %arg5: memref<1x128xf32, #tpu.memory_space<vmem>>, %arg6: memref<1x128xf32, #tpu.memory_space<vmem>>, %arg7: memref<1x1xf32, #tpu.memory_space<vmem>>, %arg8: memref<2x16xf32, #tpu.memory_space<vmem>>, %arg9: memref<2x128xf32, #tpu.memory_space<vmem>>) attributes {dimension_semantics = [#tpu.dimension_semantics<parallel>], iteration_bounds = array<i64: 1>, scalar_prefetch = 0 : i64, scratch_operands = 0 : i64, tpu.core_type = #tpu.core_type<tc>, window_params = [{transform_indices = @transform_0, window_bounds = array<i64: 2, 16, 128>}, {transform_indices = @transform_1, window_bounds = array<i64: 2, 16, 128>}, {transform_indices = @transform_2, window_bounds = array<i64: 2, 128>}, {pipeline_mode = #tpu.pipeline_mode<synchronous>, transform_indices = @transform_3, window_bounds = array<i64: 128, 128>}, {pipeline_mode = #tpu.pipeline_mode<synchronous>, transform_indices = @transform_4, window_bounds = array<i64: 1, 128>}, {pipeline_mode = #tpu.pipeline_mode<synchronous>, transform_indices = @transform_5, window_bounds = array<i64: 1, 128>}, {pipeline_mode = #tpu.pipeline_mode<synchronous>, transform_indices = @transform_6, window_bounds = array<i64: 1, 1>}, {transform_indices = @transform_7, window_bounds = array<i64: 2, 16>}, {transform_indices = @transform_8, window_bounds = array<i64: 2, 128>}]} {
    %c0 = arith.constant 0 : index
    %c0_0 = arith.constant 0 : index
    %0 = vector.load %arg3[%c0, %c0_0] : memref<2x128xf32, #tpu.memory_space<vmem>>, vector<2x128xf32>
    %c0_1 = arith.constant 0 : index
    %c0_2 = arith.constant 0 : index
    %1 = vector.load %arg4[%c0_1, %c0_2] : memref<128x128xf32, #tpu.memory_space<vmem>>, vector<128x128xf32>
    %cst = arith.constant dense<0.000000e+00> : vector<2x128xf32>
    %2 = tpu.matmul %0, %1, %cst {dimension_numbers = #tpu.dot_dimension_numbers<[1], [0], [0], [1], [0, 0, 1, 1], [], []>} : vector<2x128xf32>, vector<128x128xf32>, vector<2x128xf32> -> vector<2x128xf32>
    %c0_3 = arith.constant 0 : index
    %c0_4 = arith.constant 0 : index
    %3 = vector.load %arg5[%c0_3, %c0_4] : memref<1x128xf32, #tpu.memory_space<vmem>>, vector<1x128xf32>
    %4 = vector.broadcast %3 : vector<1x128xf32> to vector<2x128xf32>
    %5 = arith.addf %2, %4 : vector<2x128xf32>
    %c0_5 = arith.constant 0 : index
    %c0_6 = arith.constant 0 : index
    %c0_7 = arith.constant 0 : index
    %6 = vector.load %arg2[%c0_5, %c0_6, %c0_7] : memref<2x16x128xf32, #tpu.memory_space<vmem>>, vector<2x16x128xf32>
    %7 = vector.shape_cast %5 : vector<2x128xf32> to vector<2x1x128xf32>
    %8 = vector.broadcast %7 : vector<2x1x128xf32> to vector<2x16x128xf32>
    %9 = arith.addf %6, %8 : vector<2x16x128xf32>
    %10 = math.tanh %9 : vector<2x16x128xf32>
    %c0_8 = arith.constant 0 : index
    %c0_9 = arith.constant 0 : index
    %11 = vector.load %arg6[%c0_8, %c0_9] : memref<1x128xf32, #tpu.memory_space<vmem>>, vector<1x128xf32>
    %12 = vector.shape_cast %11 : vector<1x128xf32> to vector<1x1x128xf32>
    %13 = vector.broadcast %12 : vector<1x1x128xf32> to vector<2x16x128xf32>
    %14 = arith.mulf %10, %13 : vector<2x16x128xf32>
    %cst_10 = arith.constant dense<0.000000e+00> : vector<2x16xf32>
    %15 = vector.multi_reduction <add>, %14, %cst_10 [2] : vector<2x16x128xf32> to vector<2x16xf32>
    %c0_11 = arith.constant 0 : index
    %c0_12 = arith.constant 0 : index
    %16 = vector.load %arg7[%c0_11, %c0_12] : memref<1x1xf32, #tpu.memory_space<vmem>>, vector<1x1xf32>
    %17 = vector.broadcast %16 : vector<1x1xf32> to vector<2x16xf32>
    %18 = arith.addf %15, %17 : vector<2x16xf32>
    %cst_13 = arith.constant dense<0xFF800000> : vector<2xf32>
    %19 = vector.multi_reduction <maximumf>, %18, %cst_13 [1] : vector<2x16xf32> to vector<2xf32>
    %20 = vector.shape_cast %19 : vector<2xf32> to vector<2x1xf32>
    %21 = vector.broadcast %20 : vector<2x1xf32> to vector<2x16xf32>
    %22 = arith.subf %18, %21 : vector<2x16xf32>
    %23 = math.exp %22 : vector<2x16xf32>
    %cst_14 = arith.constant dense<0.000000e+00> : vector<2xf32>
    %24 = vector.multi_reduction <add>, %23, %cst_14 [1] : vector<2x16xf32> to vector<2xf32>
    %25 = vector.shape_cast %24 : vector<2xf32> to vector<2x1xf32>
    %26 = vector.broadcast %25 : vector<2x1xf32> to vector<2x16xf32>
    %27 = arith.divf %23, %26 : vector<2x16xf32>
    %c0_15 = arith.constant 0 : index
    %c0_16 = arith.constant 0 : index
    %28 = vector.load %arg8[%c0_15, %c0_16] : memref<2x16xf32, #tpu.memory_space<vmem>>, vector<2x16xf32>
    tpu.vector_store %arg8[%c0_15, %c0_16], %27 {strides = array<i32>} : memref<2x16xf32, #tpu.memory_space<vmem>>, vector<2x16xf32>,
    %29 = vector.shape_cast %27 : vector<2x16xf32> to vector<2x1x16xf32>
    %c0_17 = arith.constant 0 : index
    %c0_18 = arith.constant 0 : index
    %c0_19 = arith.constant 0 : index
    %30 = vector.load %arg1[%c0_17, %c0_18, %c0_19] : memref<2x16x128xf32, #tpu.memory_space<vmem>>, vector<2x16x128xf32>
    "tpu.trace_start"() <{level = 10 : i32, message = "bql,ble->bqe"}> : () -> ()
    %cst_20 = arith.constant dense<0.000000e+00> : vector<2x1x128xf32>
    %31 = tpu.matmul %29, %30, %cst_20 {dimension_numbers = #tpu.dot_dimension_numbers<[2], [1], [1], [2], [0, 0, 0, 1, 1, 2], [0], [0]>} : vector<2x1x16xf32>, vector<2x16x128xf32>, vector<2x1x128xf32> -> vector<2x1x128xf32>
    "tpu.trace_stop"() : () -> ()
    %32 = vector.shape_cast %31 : vector<2x1x128xf32> to vector<2x128xf32>
    %c0_21 = arith.constant 0 : index
    %c0_22 = arith.constant 0 : index
    %33 = vector.load %arg9[%c0_21, %c0_22] : memref<2x128xf32, #tpu.memory_space<vmem>>, vector<2x128xf32>
    tpu.vector_store %arg9[%c0_21, %c0_22], %32 {strides = array<i32>} : memref<2x128xf32, #tpu.memory_space<vmem>>, vector<2x128xf32>,
    return
  }
  func.func @transform_0(%arg0: i32) -> (i32, i32, i32) {
    %c0_i32 = arith.constant 0 : i32
    %c0_i32_0 = arith.constant 0 : i32
    %c0_i32_1 = arith.constant 0 : i32
    return %arg0, %c0_i32, %c0_i32_0 : i32, i32, i32
  }
  func.func @transform_1(%arg0: i32) -> (i32, i32, i32) {
    %c0_i32 = arith.constant 0 : i32
    %c0_i32_0 = arith.constant 0 : i32
    %c0_i32_1 = arith.constant 0 : i32
    return %arg0, %c0_i32, %c0_i32_0 : i32, i32, i32
  }
  func.func @transform_2(%arg0: i32) -> (i32, i32) {
    %c0_i32 = arith.constant 0 : i32
    %c0_i32_0 = arith.constant 0 : i32
    return %arg0, %c0_i32 : i32, i32
  }
  func.func @transform_3(%arg0: i32) -> (i32, i32) {
    %c0_i32 = arith.constant 0 : i32
    %c0_i32_0 = arith.constant 0 : i32
    %c0_i32_1 = arith.constant 0 : i32
    return %c0_i32, %c0_i32_0 : i32, i32
  }
  func.func @transform_4(%arg0: i32) -> (i32, i32) {
    %c0_i32 = arith.constant 0 : i32
    %c0_i32_0 = arith.constant 0 : i32
    %c0_i32_1 = arith.constant 0 : i32
    return %c0_i32, %c0_i32_0 : i32, i32
  }
  func.func @transform_5(%arg0: i32) -> (i32, i32) {
    %c0_i32 = arith.constant 0 : i32
    %c0_i32_0 = arith.constant 0 : i32
    %c0_i32_1 = arith.constant 0 : i32
    return %c0_i32, %c0_i32_0 : i32, i32
  }
  func.func @transform_6(%arg0: i32) -> (i32, i32) {
    %c0_i32 = arith.constant 0 : i32
    %c0_i32_0 = arith.constant 0 : i32
    %c0_i32_1 = arith.constant 0 : i32
    return %c0_i32, %c0_i32_0 : i32, i32
  }
  func.func @transform_7(%arg0: i32) -> (i32, i32) {
    %c0_i32 = arith.constant 0 : i32
    %c0_i32_0 = arith.constant 0 : i32
    return %arg0, %c0_i32 : i32, i32
  }
  func.func @transform_8(%arg0: i32) -> (i32, i32) {
    %c0_i32 = arith.constant 0 : i32
    %c0_i32_0 = arith.constant 0 : i32
    return %arg0, %c0_i32 : i32, i32
  }
}

</mosaic_0001>

<bundles_post_ra>
// kernel: tpu_custom_call.1
= control target key start
LH: loop header
LB: loop body
LE: loop exit
PB: predicated region body
PF: predicated region fallthrough
CT: control target
= control target key end

     0   :  { %s659_s0 = inlined_call_operand.hbm [shape: f32[2,16,128], index: 0, kind: input, shape index: {}]   ;;  %s660_s1 = inlined_call_operand.hbm [shape: f32[2,16,128], index: 1, kind: input, shape index: {}]   ;;  %s661_s2 = inlined_call_operand.vmem [shape: f32[2,128], index: 2, kind: input, shape index: {}]   ;;  %s662_s3 = inlined_call_operand.hbm [shape: f32[128,128], index: 3, kind: input, shape index: {}]   ;;  %s663_s4 = inlined_call_operand.vmem [shape: f32[1,128], index: 4, kind: input, shape index: {}]   ;;  %s664_s5 = inlined_call_operand.vmem [shape: f32[1,128], index: 5, kind: input, shape index: {}]   ;;  %s665_s6 = inlined_call_operand.<no memory space> [shape: f32[1,1], index: 6, kind: input, shape index: {}]   ;;  %s666_s7 = inlined_call_operand.hbm [shape: f32[2,16], index: 7, kind: output, shape index: {0}]   ;;  %s667_s8 = inlined_call_operand.hbm [shape: f32[2,128], index: 8, kind: output, shape index: {1}]  }
   0x1   :  { %v14_v0 = vstv %s665_s6 }
   0x2   :  { %15 = vst [vmem:[#allocation2] sm:$0x1] %v14_v0 }
   0x3   :  { %16 = vsyncpa [#allocation4], 0 }
   0x4   :  { %17 = vsyncpa [#allocation7], 0 }
   0x5   :  { %18 = vsyncpa [#allocation5], 0 }
   0x6   :  { %19 = vsyncpa [#allocation11], 0  ;;  %s37_s9 = sshll.u32 %s660_s1, 4  ;;  %s545_s10 = smov [#allocation6]   ;;  %s38_s9 = int_to_ptr.hbm [resolvable:$true] %s37_s9 }
   0x7   :  { %s39_s11 = sshll.u32 %s545_s10, 4  ;;  %s24_s14 = sshll.u32 %s659_s0, 4  ;;  %s40_s11 = int_to_ptr.vmem [resolvable:$true] %s39_s11  ;;  %s25_s14 = int_to_ptr.hbm [resolvable:$true] %s24_s14 }
   0x8   :  { %s546_s15 = smov 128   ;;  %s547_s16 = smov 8  }
   0x9   :  { %45 = dma.hbm_to_vmem [thread:$0]  %s38_s9, 512, %s40_s11, [#allocation7], %s546_s15, %s546_s15, %s547_s16  }
   0xa   :  { %s548_s6 = smov [#allocation3]   ;;  %s52_s20 = sshll.u32 %s662_s3, 4  ;;  %s53_s20 = int_to_ptr.hbm [resolvable:$true] %s52_s20 }
   0xb   :  { %s26_s17 = sshll.u32 %s548_s6, 4  ;;  %s549_s1 = smov [#allocation8]   ;;  %s27_s17 = int_to_ptr.vmem [resolvable:$true] %s26_s17 }
   0xc   :  { %32 = dma.hbm_to_vmem [thread:$0]  %s25_s14, 512, %s27_s17, [#allocation4], %s546_s15, %s546_s15, %s547_s16  }
   0xd   :  { %s54_s21 = sshll.u32 %s549_s1, 4  ;;  %s55_s21 = int_to_ptr.vmem [resolvable:$true] %s54_s21 }
   0xe   :  { %60 = dma.hbm_to_vmem [thread:$0]  %s53_s20, 2048, %s55_s21, [#allocation7], %s546_s15, %s546_s15, %s547_s16  }
   0xf   :  { %537 = dma.done.wait [#allocation4], 512  }
  0x10   :  { %538 = vsyncadd [#allocation4], 4294966784 }
  0x11   :  { %539 = dma.done.wait [#allocation7], 2560  }
  0x12   :  { %540 = vsyncadd [#allocation7], 4294964736  ;;  %v95_v1 = vld [vmem:[#allocation8 + $0x78] sm:$0xff]  ;;  %v94_v2 = vld [vmem:[#allocation8 + $0x70] sm:$0xff]  ;;  %v550_v19 = vmov 0   ;;  %v169_v44 = vlaneseq  ;;  %vm174_vm0 = vcmask 130112  }
  0x13   :  { %100 = vmatpush.msra.mxu0 %v95_v1  ;;  %v93_v3 = vld [vmem:[#allocation8 + $0x68] sm:$0xff]  ;;  %v92_v4 = vld [vmem:[#allocation8 + $0x60] sm:$0xff]  ;;  %v91_v5 = vld [vmem:[#allocation8 + $0x58] sm:$0xff]  ;;  %391 = vset.pattern.permute.xlu2 %v550_v19  ;;  %vm179_vm1 = vcmask 1041409   ;;  %vm182_vm2 = vcmask 123904   ;;  %vm296_vm11 = vcmask 130048  }
  0x14   :  { %v90_v6 = vld [vmem:[#allocation8 + $0x50] sm:$0xff]  ;;  %v89_v7 = vld [vmem:[#allocation8 + $0x48] sm:$0xff]  ;;  %v88_v8 = vld [vmem:[#allocation8 + $0x40] sm:$0xff]  ;;  %393 = vset.pattern.permute.xlu1 %v550_v19  ;;  %392 = vset.pattern.permute.xlu0 %v550_v19  ;;  %v619_v46 = vand.u32 127, %v169_v44  ;;  %s354_s27 = sshll.u32 %s666_s7, 4  ;;  %s552_s28 = smov [#allocation10]   ;;  %s355_s27 = int_to_ptr.hbm [resolvable:$true] %s354_s27 }
  0x15   :  { %101 = vmatpush.msra.mxu0 %v94_v2  ;;  %v87_v9 = vld [vmem:[#allocation8 + $0x38] sm:$0xff]  ;;  %v86_v10 = vld [vmem:[#allocation8 + $0x30] sm:$0xff]  ;;  %v85_v11 = vld [vmem:[#allocation8 + $0x28] sm:$0xff]  ;;  %s363_s29 = sshll.u32 %s552_s28, 4  ;;  %s365_s10 = sshll.u32 %s667_s8, 4  ;;  %s364_s29 = int_to_ptr.vmem [resolvable:$true] %s363_s29  ;;  %s366_s10 = int_to_ptr.hbm [resolvable:$true] %s365_s10 }
  0x16   :  { %v84_v12 = vld [vmem:[#allocation8 + $0x20] sm:$0xff]  ;;  %v83_v13 = vld [vmem:[#allocation8 + $0x18] sm:$0xff]  ;;  %v82_v14 = vld [vmem:[#allocation8 + $0x10] sm:$0xff]  ;;  %v622_v48 = vadd.s32 4294967288, %v619_v46 }
  0x17   :  { %102 = vmatpush.msra.mxu0 %v93_v3  ;;  %v81_v15 = vld [vmem:[#allocation8 + $0x8] sm:$0xff]  ;;  %v80_v16 = vld [vmem:[#allocation8] sm:$0xff]  ;;  %v396_v18 = vld [vmem:[#allocation2] ss:$0 sm:$0xff] }
  0x18   :  { %v79_v17 = vld [vmem:[%s661_s2] sm:$0x3]  ;;  %158 = vperm.xlu2 %391, %v396_v18   ;;  %v122_v26 = vld [vmem:[#allocation6 + $0x10] sm:$0xff]  ;;  %v121_v29 = vld [vmem:[#allocation6 + $0x8] sm:$0xff] }
  0x19   :  { %103 = vmatpush.msra.mxu0 %v92_v4  ;;  %v394_v20 = vld [vmem:[%s663_s4] ss:$0 sm:$0xff]  ;;  %v120_v23 = vld [vmem:[#allocation6] sm:$0xff]  ;;  %s551_s4 = smov [#allocation9]  }
  0x1a   :  { %v123_v31 = vld [vmem:[#allocation6 + $0x18] sm:$0xff] }
  0x1b   :  { %104 = vmatpush.msra.mxu0 %v91_v5  ;;  %v395_v33 = vld [vmem:[%s664_s5] ss:$0 sm:$0xff]  ;;  %s352_s5 = sshll.u32 %s551_s4, 4  ;;  %s353_s5 = int_to_ptr.vmem [resolvable:$true] %s352_s5 }
  0x1d   :  { %105 = vmatpush.msra.mxu0 %v90_v6 }
  0x1f   :  { %106 = vmatpush.msra.mxu0 %v89_v7 }
  0x21   :  { %107 = vmatpush.msra.mxu0 %v88_v8 }
  0x23   :  { %108 = vmatpush.msra.mxu0 %v87_v9 }
  0x25   :  { %109 = vmatpush.msra.mxu0 %v86_v10 }
  0x27   :  { %110 = vmatpush.msra.mxu0 %v85_v11 }
  0x29   :  { %111 = vmatpush.msra.mxu0 %v84_v12 }
  0x2b   :  { %112 = vmatpush.msra.mxu0 %v83_v13 }
  0x2d   :  { %113 = vmatpush.msra.mxu0 %v82_v14 }
  0x2f   :  { %114 = vmatpush.msra.mxu0 %v81_v15 }
  0x31   :  { %115 = vmatpush.msra.mxu0 %v80_v16 }
  0x32   :  { %116 = vmatmul.f32.vlgmr.msra.gmra.mxu0 %v79_v17 }
  0x72   :  { %v159_v47 = vpop.permute.xlu2 %158 }
  0xaf   :  { %v117_v21 = vpop.f32.mrf.mxu0 }
  0xb0   :  { %v118_v22 = vadd.f32 %v394_v20, %v117_v21 }
  0xb2   :  { %v125_v24 = vrot.slane %v118_v22, 1  ;;  %v126_v25 = vperm.slane %v118_v22, 0 }
  0xb4   :  { %v127_v27 = vperm.slane %v125_v24, 0  ;;  %v130_v28 = vadd.f32 %v126_v25, %v120_v23  ;;  %v131_v32 = vadd.f32 %v126_v25, %v121_v29 }
  0xb6   :  { %v132_v30 = vadd.f32 %v127_v27, %v122_v26  ;;  %397 = vtanh.f32 %v130_v28  ;;  %v133_v34 = vadd.f32 %v127_v27, %v123_v31 }
  0xb8   :  { %399 = vtanh.f32 %v132_v30 }
  0xb9   :  { %401 = vtanh.f32 %v131_v32 }
  0xba   :  { %403 = vtanh.f32 %v133_v34 }
  0xbc   :  { %v398_v35 = vpop.eup %397 }
  0xbd   :  { %v142_v36 = vmul.f32 %v398_v35, %v395_v33 }
  0xbe   :  { %v400_v37 = vpop.eup %399 }
  0xbf   :  { %146 = vadd.xlane.f32.xlu0 %v142_v36  ;;  %v144_v38 = vmul.f32 %v400_v37, %v395_v33  ;;  %v402_v39 = vpop.eup %401 }
  0xc0   :  { %v404_v40 = vpop.eup %403  ;;  %v143_v41 = vmul.f32 %v402_v39, %v395_v33 }
  0xc1   :  { %150 = vadd.xlane.f32.xlu1 %v144_v38  ;;  %v145_v42 = vmul.f32 %v404_v40, %v395_v33 }
  0xc7   :  { %148 = vadd.xlane.f32.xlu0 %v143_v41 }
  0xc9   :  { %152 = vadd.xlane.f32.xlu1 %v145_v42 }
 0x132   :  { %v147_v43 = vpop.xlane.xlu0 %146 }
 0x133   :  { %v161_v50 = vadd.f32 %v159_v47, %v147_v43 }
 0x134   :  { %v151_v45 = vpop.xlane.xlu1 %150 }
 0x135   :  { %v163_v51 = vadd.f32 %v159_v47, %v151_v45  ;;  %v171_v56 = vperm.slane %v161_v50, %v619_v46 }
 0x137   :  { %v176_v57 = vperm.slane %v163_v51, %v619_v46 }
 0x13a   :  { %v149_v49 = vpop.xlane.xlu0 %148 }
 0x13b   :  { %v162_v52 = vadd.f32 %v159_v47, %v149_v49 }
 0x13c   :  { %v153_v53 = vpop.xlane.xlu1 %152 }
 0x13d   :  { %v173_v54 = vperm.slane %v162_v52, %v622_v48  ;;  %v164_v55 = vadd.f32 %v159_v47, %v153_v53 }
 0x13f   :  { %v177_v58 = vperm.slane %v164_v55, %v622_v48  ;;  %v175_v59 = vsel %vm174_vm0, %v173_v54, %v171_v56  ;;  %v294_v56 = vld [vmem:[#allocation3 + $0x10] sm:$0xff] }
 0x141   :  { %v178_v60 = vsel %vm174_vm0, %v177_v58, %v176_v57  ;;  %v293_v57 = vld [vmem:[#allocation3 + $0x8] sm:$0xff]  ;;  %v292_v58 = vld [vmem:[#allocation3] sm:$0xff] }
 0x142   :  { %v180_v61 = vsel %vm179_vm1, %v178_v60, %v175_v59  ;;  %313 = vmatpush.msra.mxu1 %v293_v57 }
 0x143   :  { %v183_v62 = vsel %vm182_vm2, %v180_v61, -inf }
 0x144   :  { %184 = vmax.xlane.f32.xlu2 %v183_v62  ;;  %314 = vmatpush.msra.mxu1 %v292_v58 }
 0x1b7   :  { %v185_v63 = vpop.xlane.xlu2 %184 }
 0x1b8   :  { %v187_v0 = vperm.slane %v185_v63, 0  ;;  %v188_v3 = vperm.slane %v185_v63, 1 }
 0x1ba   :  { %v191_v1 = vsub.f32 %v161_v50, %v187_v0  ;;  %v192_v2 = vsub.f32 %v162_v52, %v187_v0  ;;  %v193_v6 = vsub.f32 %v163_v51, %v188_v3  ;;  %v194_v10 = vsub.f32 %v164_v55, %v188_v3  ;;  %v295_v55 = vld [vmem:[#allocation3 + $0x18] sm:$0xff] }
 0x1bb   :  { %335 = vmatpush.msra.mxu2 %v295_v55 }
 0x1bc   :  { %v195_v4 = vmul.f32 1.442695, %v191_v1  ;;  %v197_v5 = vmul.f32 1.442695, %v192_v2  ;;  %v199_v7 = vmul.f32 1.442695, %v193_v6 }
 0x1bd   :  { %v201_v11 = vmul.f32 1.442695, %v194_v10  ;;  %336 = vmatpush.msra.mxu2 %v294_v56 }
 0x1be   :  { %405 = vpow2.f32 %v195_v4 }
 0x1bf   :  { %407 = vpow2.f32 %v197_v5 }
 0x1c0   :  { %409 = vpow2.f32 %v199_v7 }
 0x1c1   :  { %411 = vpow2.f32 %v201_v11 }
 0x1c4   :  { %v406_v8 = vpop.eup %405 }
 0x1c5   :  { %v632_v9 = vpop.eup %407  ;;  %208 = vperm.xlu0 %392, %v406_v8  }
 0x1c6   :  { %211 = vperm.xlu1 %393, %v632_v9   ;;  %v410_v12 = vpop.eup %409 }
 0x1c7   :  { %v412_v13 = vpop.eup %411 }
 0x1ce   :  { %214 = vperm.xlu1 %393, %v410_v12  }
 0x1d6   :  { %217 = vperm.xlu1 %393, %v412_v13  }
 0x237   :  { %v209_v16 = vpop.permute.xlu0 %208 }
 0x238   :  { %v212_v14 = vpop.permute.xlu1 %211  ;;  %v219_v18 = vperm.slane %v209_v16, %v619_v46 }
 0x239   :  { %v220_v17 = vperm.slane %v212_v14, %v622_v48 }
 0x23b   :  { %v221_v22 = vsel %vm174_vm0, %v220_v17, %v219_v18 }
 0x240   :  { %v215_v15 = vpop.permute.xlu1 %214 }
 0x241   :  { %v222_v20 = vperm.slane %v215_v15, %v619_v46 }
 0x248   :  { %v218_v19 = vpop.permute.xlu1 %217 }
 0x249   :  { %v223_v21 = vperm.slane %v218_v19, %v622_v48 }
 0x24b   :  { %v224_v23 = vsel %vm174_vm0, %v223_v21, %v222_v20 }
 0x24c   :  { %v225_v24 = vsel %vm179_vm1, %v224_v23, %v221_v22 }
 0x24d   :  { %v227_v25 = vsel %vm182_vm2, %v225_v24, 0.0 }
 0x24e   :  { %228 = vadd.xlane.f32.xlu2 %v227_v25 }
 0x2c1   :  { %v229_v26 = vpop.xlane.xlu2 %228 }
 0x2c2   :  { %v231_v27 = vperm.slane %v229_v26, 0  ;;  %v232_v28 = vperm.slane %v229_v26, 1 }
 0x2c4   :  { %413 = vrcp.f32 %v231_v27  ;;  %v246_v35 = vand.u32 2147483648, %v231_v27  ;;  %v262_v36 = vand.u32 2147483648, %v232_v28  ;;  %v244_v38 = vand.u32 2147483647, %v231_v27 }
 0x2c5   :  { %415 = vrcp.f32 %v232_v28  ;;  %v260_v40 = vand.u32 2147483647, %v232_v28  ;;  %vm240_vm5 = vweird.f32 %v231_v27  ;;  %vm256_vm6 = vweird.f32 %v232_v28 }
 0x2c6   :  { %v247_v43 = vor.u32 1.1754944e-38, %v246_v35  ;;  %v263_v44 = vor.u32 1.1754944e-38, %v262_v36  ;;  %vm245_vm9 = vcmp.eq.f32.partialorder %v244_v38, 8.507059e+37 }
 0x2c7   :  { %vm261_vm10 = vcmp.eq.f32.partialorder %v260_v40, 8.507059e+37 }
 0x2ca   :  { %v414_v29 = vpop.eup %413 }
 0x2cb   :  { %v416_v30 = vpop.eup %415  ;;  %v236_v31 = vmul.f32 %v414_v29, %v231_v27  ;;  %vm241_vm3 = vweird.f32 %v414_v29 }
 0x2cc   :  { %v252_v32 = vmul.f32 %v416_v30, %v232_v28  ;;  %vm257_vm4 = vweird.f32 %v416_v30  ;;  %vm242_vm7 = vmor %vm240_vm5, %vm241_vm3 }
 0x2cd   :  { %v237_v33 = vsub.f32 1.0, %v236_v31  ;;  %vm258_vm8 = vmor %vm256_vm6, %vm257_vm4 }
 0x2ce   :  { %v253_v34 = vsub.f32 1.0, %v252_v32 }
 0x2cf   :  { %v238_v37 = vmul.f32 %v414_v29, %v237_v33 }
 0x2d0   :  { %v254_v39 = vmul.f32 %v416_v30, %v253_v34 }
 0x2d1   :  { %v239_v41 = vadd.f32 %v414_v29, %v238_v37 }
 0x2d2   :  { %v255_v42 = vadd.f32 %v416_v30, %v254_v39 }
 0x2d3   :  { %v243_v45 = vsel %vm242_vm7, %v414_v29, %v239_v41 }
 0x2d4   :  { %v259_v47 = vsel %vm258_vm8, %v416_v30, %v255_v42  ;;  %v248_v49 = vsel %vm245_vm9, %v247_v43, %v243_v45 }
 0x2d5   :  { %v264_v50 = vsel %vm261_vm10, %v263_v44, %v259_v47  ;;  %v249_v51 = vmul.f32 %v406_v8, %v248_v49  ;;  %v250_v54 = vmul.f32 %v632_v9, %v248_v49 }
 0x2d6   :  { %v266_v52 = vmul.f32 %v412_v13, %v264_v50  ;;  %v265_v53 = vmul.f32 %v410_v12, %v264_v50 }
 0x2d7   :  { %272 = vperm.xlu2 %391, %v249_v51  }
 0x2d8   :  { %281 = vperm.xlu1 %393, %v266_v52   ;;  %278 = vperm.xlu0 %392, %v265_v53  }
 0x2e0   :  { %275 = vperm.xlu0 %392, %v250_v54  }
 0x331   :  { %v273_v0 = vpop.permute.xlu2 %272 }
 0x332   :  { %v283_v2 = vperm.slane %v273_v0, %v619_v46 }
 0x34a   :  { %v282_v59 = vpop.permute.xlu1 %281  ;;  %v279_v60 = vpop.permute.xlu0 %278 }
 0x34b   :  { %v287_v61 = vperm.slane %v282_v59, %v622_v48  ;;  %v286_v62 = vperm.slane %v279_v60, %v619_v46 }
 0x34d   :  { %v288_v63 = vsel %vm174_vm0, %v287_v61, %v286_v62 }
 0x34e   :  { %382 = vmatmul.msk.f32.vlgmr.msra.gmra.mxu2 %vm296_vm11, %v288_v63 }
 0x352   :  { %v276_v1 = vpop.permute.xlu0 %275 }
 0x353   :  { %v284_v3 = vperm.slane %v276_v1, %v622_v48 }
 0x355   :  { %v285_v4 = vsel %vm174_vm0, %v284_v3, %v283_v2 }
 0x356   :  { %v289_v5 = vsel %vm179_vm1, %v288_v63, %v285_v4  ;;  %381 = vmatmul.msk.f32.vlgmr.msra.gmra.mxu1 %vm296_vm11, %v285_v4 }
 0x357   :  { %291 = vst.msk [vmem:[#allocation9] sm:$0x3] %vm182_vm2, %v289_v5 }
 0x358   :  { %357 = dma.vmem_to_hbm [thread:$0]  %s353_s5, 32, %s355_s27, [#allocation5]  }
 0x3d1   :  { %v338_v46 = vpop.f32.mrf.mxu2 }
 0x3d2   :  { %v343_v48 = vrot.slane %v338_v46, 7 }
 0x3d3   :  { %v316_v6 = vpop.f32.mrf.mxu1 }
 0x3d4   :  { %v344_v7 = vsel %vm179_vm1, %v343_v48, %v316_v6 }
 0x3d5   :  { %346 = vst [vmem:[#allocation10] sm:$0x3] %v344_v7 }
 0x3d6   :  { %368 = dma.vmem_to_hbm [thread:$0]  %s364_s29, 32, %s366_s10, [#allocation11]  }
 0x3d7   :  { %541 = dma.done.wait [#allocation5], 32  }
 0x3d8   :  { %542 = vsyncadd [#allocation5], 4294967264 }
 0x3d9   :  { %543 = dma.done.wait [#allocation11], 32  }
 0x3da   :  { %544 = vsyncadd [#allocation11], 4294967264 }
 0x3db   :  { %377 = vsyncpa [#allocation4], 1 }
 0x3dc   :  { %378 = vsyncpa [#allocation7], 1 }
 0x3dd   :  { %379 = vsyncpa [#allocation5], 1 }
 0x3de   :  { %380 = vsyncpa [#allocation11], 1 }

// kernel: tpu_custom_call.1
= control target key start
LH: loop header
LB: loop body
LE: loop exit
PB: predicated region body
PF: predicated region fallthrough
CT: control target
= control target key end

     0   :  { %s659_s0 = inlined_call_operand.hbm [shape: f32[2,16,128], index: 0, kind: input, shape index: {}]   ;;  %s660_s1 = inlined_call_operand.hbm [shape: f32[2,16,128], index: 1, kind: input, shape index: {}]   ;;  %s661_s2 = inlined_call_operand.vmem [shape: f32[2,128], index: 2, kind: input, shape index: {}]   ;;  %s662_s3 = inlined_call_operand.hbm [shape: f32[128,128], index: 3, kind: input, shape index: {}]   ;;  %s663_s4 = inlined_call_operand.vmem [shape: f32[1,128], index: 4, kind: input, shape index: {}]   ;;  %s664_s5 = inlined_call_operand.vmem [shape: f32[1,128], index: 5, kind: input, shape index: {}]   ;;  %s665_s6 = inlined_call_operand.<no memory space> [shape: f32[1,1], index: 6, kind: input, shape index: {}]   ;;  %s666_s7 = inlined_call_operand.hbm [shape: f32[2,16], index: 7, kind: output, shape index: {0}]   ;;  %s667_s8 = inlined_call_operand.hbm [shape: f32[2,128], index: 8, kind: output, shape index: {1}]  }
   0x1   :  { %v14_v0 = vstv %s665_s6 }
   0x2   :  { %15 = vst [vmem:[#allocation2] sm:$0x1] %v14_v0 }
   0x3   :  { %16 = vsyncpa [#allocation4], 0 }
   0x4   :  { %17 = vsyncpa [#allocation7], 0 }
   0x5   :  { %18 = vsyncpa [#allocation5], 0 }
   0x6   :  { %19 = vsyncpa [#allocation11], 0  ;;  %s37_s9 = sshll.u32 %s660_s1, 4  ;;  %s545_s10 = smov [#allocation6]   ;;  %s38_s9 = int_to_ptr.hbm [resolvable:$true] %s37_s9 }
   0x7   :  { %s39_s11 = sshll.u32 %s545_s10, 4  ;;  %s24_s14 = sshll.u32 %s659_s0, 4  ;;  %s40_s11 = int_to_ptr.vmem [resolvable:$true] %s39_s11  ;;  %s25_s14 = int_to_ptr.hbm [resolvable:$true] %s24_s14 }
   0x8   :  { %s546_s15 = smov 128   ;;  %s547_s16 = smov 8  }
   0x9   :  { %45 = dma.hbm_to_vmem [thread:$0]  %s38_s9, 512, %s40_s11, [#allocation7], %s546_s15, %s546_s15, %s547_s16  }
   0xa   :  { %s548_s6 = smov [#allocation3]   ;;  %s52_s20 = sshll.u32 %s662_s3, 4  ;;  %s53_s20 = int_to_ptr.hbm [resolvable:$true] %s52_s20 }
   0xb   :  { %s26_s17 = sshll.u32 %s548_s6, 4  ;;  %s549_s1 = smov [#allocation8]   ;;  %s27_s17 = int_to_ptr.vmem [resolvable:$true] %s26_s17 }
   0xc   :  { %32 = dma.hbm_to_vmem [thread:$0]  %s25_s14, 512, %s27_s17, [#allocation4], %s546_s15, %s546_s15, %s547_s16  }
   0xd   :  { %s54_s21 = sshll.u32 %s549_s1, 4  ;;  %s55_s21 = int_to_ptr.vmem [resolvable:$true] %s54_s21 }
   0xe   :  { %60 = dma.hbm_to_vmem [thread:$0]  %s53_s20, 2048, %s55_s21, [#allocation7], %s546_s15, %s546_s15, %s547_s16  }
   0xf   :  { %537 = dma.done.wait [#allocation4], 512  }
  0x10   :  { %538 = vsyncadd [#allocation4], 4294966784 }
  0x11   :  { %539 = dma.done.wait [#allocation7], 2560  }
  0x12   :  { %540 = vsyncadd [#allocation7], 4294964736  ;;  %v95_v1 = vld [vmem:[#allocation8 + $0x78] sm:$0xff]  ;;  %v94_v2 = vld [vmem:[#allocation8 + $0x70] sm:$0xff]  ;;  %v550_v19 = vmov 0   ;;  %v169_v44 = vlaneseq  ;;  %vm174_vm0 = vcmask 130112  }
  0x13   :  { %100 = vmatpush.msra.mxu0 %v95_v1  ;;  %v93_v3 = vld [vmem:[#allocation8 + $0x68] sm:$0xff]  ;;  %v92_v4 = vld [vmem:[#allocation8 + $0x60] sm:$0xff]  ;;  %v91_v5 = vld [vmem:[#allocation8 + $0x58] sm:$0xff]  ;;  %391 = vset.pattern.permute.xlu2 %v550_v19  ;;  %vm179_vm1 = vcmask 1041409   ;;  %vm182_vm2 = vcmask 123904   ;;  %vm296_vm11 = vcmask 130048  }
  0x14   :  { %v90_v6 = vld [vmem:[#allocation8 + $0x50] sm:$0xff]  ;;  %v89_v7 = vld [vmem:[#allocation8 + $0x48] sm:$0xff]  ;;  %v88_v8 = vld [vmem:[#allocation8 + $0x40] sm:$0xff]  ;;  %393 = vset.pattern.permute.xlu1 %v550_v19  ;;  %392 = vset.pattern.permute.xlu0 %v550_v19  ;;  %v619_v46 = vand.u32 127, %v169_v44  ;;  %s354_s27 = sshll.u32 %s666_s7, 4  ;;  %s552_s28 = smov [#allocation10]   ;;  %s355_s27 = int_to_ptr.hbm [resolvable:$true] %s354_s27 }
  0x15   :  { %101 = vmatpush.msra.mxu0 %v94_v2  ;;  %v87_v9 = vld [vmem:[#allocation8 + $0x38] sm:$0xff]  ;;  %v86_v10 = vld [vmem:[#allocation8 + $0x30] sm:$0xff]  ;;  %v85_v11 = vld [vmem:[#allocation8 + $0x28] sm:$0xff]  ;;  %s363_s29 = sshll.u32 %s552_s28, 4  ;;  %s365_s10 = sshll.u32 %s667_s8, 4  ;;  %s364_s29 = int_to_ptr.vmem [resolvable:$true] %s363_s29  ;;  %s366_s10 = int_to_ptr.hbm [resolvable:$true] %s365_s10 }
  0x16   :  { %v84_v12 = vld [vmem:[#allocation8 + $0x20] sm:$0xff]  ;;  %v83_v13 = vld [vmem:[#allocation8 + $0x18] sm:$0xff]  ;;  %v82_v14 = vld [vmem:[#allocation8 + $0x10] sm:$0xff]  ;;  %v622_v48 = vadd.s32 4294967288, %v619_v46 }
  0x17   :  { %102 = vmatpush.msra.mxu0 %v93_v3  ;;  %v81_v15 = vld [vmem:[#allocation8 + $0x8] sm:$0xff]  ;;  %v80_v16 = vld [vmem:[#allocation8] sm:$0xff]  ;;  %v396_v18 = vld [vmem:[#allocation2] ss:$0 sm:$0xff] }
  0x18   :  { %v79_v17 = vld [vmem:[%s661_s2] sm:$0x3]  ;;  %158 = vperm.xlu2 %391, %v396_v18   ;;  %v122_v26 = vld [vmem:[#allocation6 + $0x10] sm:$0xff]  ;;  %v121_v29 = vld [vmem:[#allocation6 + $0x8] sm:$0xff] }
  0x19   :  { %103 = vmatpush.msra.mxu0 %v92_v4  ;;  %v394_v20 = vld [vmem:[%s663_s4] ss:$0 sm:$0xff]  ;;  %v120_v23 = vld [vmem:[#allocation6] sm:$0xff]  ;;  %s551_s4 = smov [#allocation9]  }
  0x1a   :  { %v123_v31 = vld [vmem:[#allocation6 + $0x18] sm:$0xff] }
  0x1b   :  { %104 = vmatpush.msra.mxu0 %v91_v5  ;;  %v395_v33 = vld [vmem:[%s664_s5] ss:$0 sm:$0xff]  ;;  %s352_s5 = sshll.u32 %s551_s4, 4  ;;  %s353_s5 = int_to_ptr.vmem [resolvable:$true] %s352_s5 }
  0x1d   :  { %105 = vmatpush.msra.mxu0 %v90_v6 }
  0x1f   :  { %106 = vmatpush.msra.mxu0 %v89_v7 }
  0x21   :  { %107 = vmatpush.msra.mxu0 %v88_v8 }
  0x23   :  { %108 = vmatpush.msra.mxu0 %v87_v9 }
  0x25   :  { %109 = vmatpush.msra.mxu0 %v86_v10 }
  0x27   :  { %110 = vmatpush.msra.mxu0 %v85_v11 }
  0x29   :  { %111 = vmatpush.msra.mxu0 %v84_v12 }
  0x2b   :  { %112 = vmatpush.msra.mxu0 %v83_v13 }
  0x2d   :  { %113 = vmatpush.msra.mxu0 %v82_v14 }
  0x2f   :  { %114 = vmatpush.msra.mxu0 %v81_v15 }
  0x31   :  { %115 = vmatpush.msra.mxu0 %v80_v16 }
  0x32   :  { %116 = vmatmul.f32.vlgmr.msra.gmra.mxu0 %v79_v17 }
  0x72   :  { %v159_v47 = vpop.permute.xlu2 %158 }
  0xaf   :  { %v117_v21 = vpop.f32.mrf.mxu0 }
  0xb0   :  { %v118_v22 = vadd.f32 %v394_v20, %v117_v21 }
  0xb2   :  { %v125_v24 = vrot.slane %v118_v22, 1  ;;  %v126_v25 = vperm.slane %v118_v22, 0 }
  0xb4   :  { %v127_v27 = vperm.slane %v125_v24, 0  ;;  %v130_v28 = vadd.f32 %v126_v25, %v120_v23  ;;  %v131_v32 = vadd.f32 %v126_v25, %v121_v29 }
  0xb6   :  { %v132_v30 = vadd.f32 %v127_v27, %v122_v26  ;;  %397 = vtanh.f32 %v130_v28  ;;  %v133_v34 = vadd.f32 %v127_v27, %v123_v31 }
  0xb8   :  { %399 = vtanh.f32 %v132_v30 }
  0xb9   :  { %401 = vtanh.f32 %v131_v32 }
  0xba   :  { %403 = vtanh.f32 %v133_v34 }
  0xbc   :  { %v398_v35 = vpop.eup %397 }
  0xbd   :  { %v142_v36 = vmul.f32 %v398_v35, %v395_v33 }
  0xbe   :  { %v400_v37 = vpop.eup %399 }
  0xbf   :  { %146 = vadd.xlane.f32.xlu0 %v142_v36  ;;  %v144_v38 = vmul.f32 %v400_v37, %v395_v33  ;;  %v402_v39 = vpop.eup %401 }
  0xc0   :  { %v404_v40 = vpop.eup %403  ;;  %v143_v41 = vmul.f32 %v402_v39, %v395_v33 }
  0xc1   :  { %150 = vadd.xlane.f32.xlu1 %v144_v38  ;;  %v145_v42 = vmul.f32 %v404_v40, %v395_v33 }
  0xc7   :  { %148 = vadd.xlane.f32.xlu0 %v143_v41 }
  0xc9   :  { %152 = vadd.xlane.f32.xlu1 %v145_v42 }
 0x132   :  { %v147_v43 = vpop.xlane.xlu0 %146 }
 0x133   :  { %v161_v50 = vadd.f32 %v159_v47, %v147_v43 }
 0x134   :  { %v151_v45 = vpop.xlane.xlu1 %150 }
 0x135   :  { %v163_v51 = vadd.f32 %v159_v47, %v151_v45  ;;  %v171_v56 = vperm.slane %v161_v50, %v619_v46 }
 0x137   :  { %v176_v57 = vperm.slane %v163_v51, %v619_v46 }
 0x13a   :  { %v149_v49 = vpop.xlane.xlu0 %148 }
 0x13b   :  { %v162_v52 = vadd.f32 %v159_v47, %v149_v49 }
 0x13c   :  { %v153_v53 = vpop.xlane.xlu1 %152 }
 0x13d   :  { %v173_v54 = vperm.slane %v162_v52, %v622_v48  ;;  %v164_v55 = vadd.f32 %v159_v47, %v153_v53 }
 0x13f   :  { %v177_v58 = vperm.slane %v164_v55, %v622_v48  ;;  %v175_v59 = vsel %vm174_vm0, %v173_v54, %v171_v56  ;;  %v294_v56 = vld [vmem:[#allocation3 + $0x10] sm:$0xff] }
 0x141   :  { %v178_v60 = vsel %vm174_vm0, %v177_v58, %v176_v57  ;;  %v293_v57 = vld [vmem:[#allocation3 + $0x8] sm:$0xff]  ;;  %v292_v58 = vld [vmem:[#allocation3] sm:$0xff] }
 0x142   :  { %v180_v61 = vsel %vm179_vm1, %v178_v60, %v175_v59  ;;  %313 = vmatpush.msra.mxu1 %v293_v57 }
 0x143   :  { %v183_v62 = vsel %vm182_vm2, %v180_v61, -inf }
 0x144   :  { %184 = vmax.xlane.f32.xlu2 %v183_v62  ;;  %314 = vmatpush.msra.mxu1 %v292_v58 }
 0x1b7   :  { %v185_v63 = vpop.xlane.xlu2 %184 }
 0x1b8   :  { %v187_v0 = vperm.slane %v185_v63, 0  ;;  %v188_v3 = vperm.slane %v185_v63, 1 }
 0x1ba   :  { %v191_v1 = vsub.f32 %v161_v50, %v187_v0  ;;  %v192_v2 = vsub.f32 %v162_v52, %v187_v0  ;;  %v193_v6 = vsub.f32 %v163_v51, %v188_v3  ;;  %v194_v10 = vsub.f32 %v164_v55, %v188_v3  ;;  %v295_v55 = vld [vmem:[#allocation3 + $0x18] sm:$0xff] }
 0x1bb   :  { %335 = vmatpush.msra.mxu2 %v295_v55 }
 0x1bc   :  { %v195_v4 = vmul.f32 1.442695, %v191_v1  ;;  %v197_v5 = vmul.f32 1.442695, %v192_v2  ;;  %v199_v7 = vmul.f32 1.442695, %v193_v6 }
 0x1bd   :  { %v201_v11 = vmul.f32 1.442695, %v194_v10  ;;  %336 = vmatpush.msra.mxu2 %v294_v56 }
 0x1be   :  { %405 = vpow2.f32 %v195_v4 }
 0x1bf   :  { %407 = vpow2.f32 %v197_v5 }
 0x1c0   :  { %409 = vpow2.f32 %v199_v7 }
 0x1c1   :  { %411 = vpow2.f32 %v201_v11 }
 0x1c4   :  { %v406_v8 = vpop.eup %405 }
 0x1c5   :  { %v632_v9 = vpop.eup %407  ;;  %208 = vperm.xlu0 %392, %v406_v8  }
 0x1c6   :  { %211 = vperm.xlu1 %393, %v632_v9   ;;  %v410_v12 = vpop.eup %409 }
 0x1c7   :  { %v412_v13 = vpop.eup %411 }
 0x1ce   :  { %214 = vperm.xlu1 %393, %v410_v12  }
 0x1d6   :  { %217 = vperm.xlu1 %393, %v412_v13  }
 0x237   :  { %v209_v16 = vpop.permute.xlu0 %208 }
 0x238   :  { %v212_v14 = vpop.permute.xlu1 %211  ;;  %v219_v18 = vperm.slane %v209_v16, %v619_v46 }
 0x239   :  { %v220_v17 = vperm.slane %v212_v14, %v622_v48 }
 0x23b   :  { %v221_v22 = vsel %vm174_vm0, %v220_v17, %v219_v18 }
 0x240   :  { %v215_v15 = vpop.permute.xlu1 %214 }
 0x241   :  { %v222_v20 = vperm.slane %v215_v15, %v619_v46 }
 0x248   :  { %v218_v19 = vpop.permute.xlu1 %217 }
 0x249   :  { %v223_v21 = vperm.slane %v218_v19, %v622_v48 }
 0x24b   :  { %v224_v23 = vsel %vm174_vm0, %v223_v21, %v222_v20 }
 0x24c   :  { %v225_v24 = vsel %vm179_vm1, %v224_v23, %v221_v22 }
 0x24d   :  { %v227_v25 = vsel %vm182_vm2, %v225_v24, 0.0 }
 0x24e   :  { %228 = vadd.xlane.f32.xlu2 %v227_v25 }
 0x2c1   :  { %v229_v26 = vpop.xlane.xlu2 %228 }
 0x2c2   :  { %v231_v27 = vperm.slane %v229_v26, 0  ;;  %v232_v28 = vperm.slane %v229_v26, 1 }
 0x2c4   :  { %413 = vrcp.f32 %v231_v27  ;;  %v246_v35 = vand.u32 2147483648, %v231_v27  ;;  %v262_v36 = vand.u32 2147483648, %v232_v28  ;;  %v244_v38 = vand.u32 2147483647, %v231_v27 }
 0x2c5   :  { %415 = vrcp.f32 %v232_v28  ;;  %v260_v40 = vand.u32 2147483647, %v232_v28  ;;  %vm240_vm5 = vweird.f32 %v231_v27  ;;  %vm256_vm6 = vweird.f32 %v232_v28 }
 0x2c6   :  { %v247_v43 = vor.u32 1.1754944e-38, %v246_v35  ;;  %v263_v44 = vor.u32 1.1754944e-38, %v262_v36  ;;  %vm245_vm9 = vcmp.eq.f32.partialorder %v244_v38, 8.507059e+37 }
 0x2c7   :  { %vm261_vm10 = vcmp.eq.f32.partialorder %v260_v40, 8.507059e+37 }
 0x2ca   :  { %v414_v29 = vpop.eup %413 }
 0x2cb   :  { %v416_v30 = vpop.eup %415  ;;  %v236_v31 = vmul.f32 %v414_v29, %v231_v27  ;;  %vm241_vm3 = vweird.f32 %v414_v29 }
 0x2cc   :  { %v252_v32 = vmul.f32 %v416_v30, %v232_v28  ;;  %vm257_vm4 = vweird.f32 %v416_v30  ;;  %vm242_vm7 = vmor %vm240_vm5, %vm241_vm3 }
 0x2cd   :  { %v237_v33 = vsub.f32 1.0, %v236_v31  ;;  %vm258_vm8 = vmor %vm256_vm6, %vm257_vm4 }
 0x2ce   :  { %v253_v34 = vsub.f32 1.0, %v252_v32 }
 0x2cf   :  { %v238_v37 = vmul.f32 %v414_v29, %v237_v33 }
 0x2d0   :  { %v254_v39 = vmul.f32 %v416_v30, %v253_v34 }
 0x2d1   :  { %v239_v41 = vadd.f32 %v414_v29, %v238_v37 }
 0x2d2   :  { %v255_v42 = vadd.f32 %v416_v30, %v254_v39 }
 0x2d3   :  { %v243_v45 = vsel %vm242_vm7, %v414_v29, %v239_v41 }
 0x2d4   :  { %v259_v47 = vsel %vm258_vm8, %v416_v30, %v255_v42  ;;  %v248_v49 = vsel %vm245_vm9, %v247_v43, %v243_v45 }
 0x2d5   :  { %v264_v50 = vsel %vm261_vm10, %v263_v44, %v259_v47  ;;  %v249_v51 = vmul.f32 %v406_v8, %v248_v49  ;;  %v250_v54 = vmul.f32 %v632_v9, %v248_v49 }
 0x2d6   :  { %v266_v52 = vmul.f32 %v412_v13, %v264_v50  ;;  %v265_v53 = vmul.f32 %v410_v12, %v264_v50 }
 0x2d7   :  { %272 = vperm.xlu2 %391, %v249_v51  }
 0x2d8   :  { %281 = vperm.xlu1 %393, %v266_v52   ;;  %278 = vperm.xlu0 %392, %v265_v53  }
 0x2e0   :  { %275 = vperm.xlu0 %392, %v250_v54  }
 0x331   :  { %v273_v0 = vpop.permute.xlu2 %272 }
 0x332   :  { %v283_v2 = vperm.slane %v273_v0, %v619_v46 }
 0x34a   :  { %v282_v59 = vpop.permute.xlu1 %281  ;;  %v279_v60 = vpop.permute.xlu0 %278 }
 0x34b   :  { %v287_v61 = vperm.slane %v282_v59, %v622_v48  ;;  %v286_v62 = vperm.slane %v279_v60, %v619_v46 }
 0x34d   :  { %v288_v63 = vsel %vm174_vm0, %v287_v61, %v286_v62 }
 0x34e   :  { %382 = vmatmul.msk.f32.vlgmr.msra.gmra.mxu2 %vm296_vm11, %v288_v63 }
 0x352   :  { %v276_v1 = vpop.permute.xlu0 %275 }
 0x353   :  { %v284_v3 = vperm.slane %v276_v1, %v622_v48 }
 0x355   :  { %v285_v4 = vsel %vm174_vm0, %v284_v3, %v283_v2 }
 0x356   :  { %v289_v5 = vsel %vm179_vm1, %v288_v63, %v285_v4  ;;  %381 = vmatmul.msk.f32.vlgmr.msra.gmra.mxu1 %vm296_vm11, %v285_v4 }
 0x357   :  { %291 = vst.msk [vmem:[#allocation9] sm:$0x3] %vm182_vm2, %v289_v5 }
 0x358   :  { %357 = dma.vmem_to_hbm [thread:$0]  %s353_s5, 32, %s355_s27, [#allocation5]  }
 0x3d1   :  { %v338_v46 = vpop.f32.mrf.mxu2 }
 0x3d2   :  { %v343_v48 = vrot.slane %v338_v46, 7 }
 0x3d3   :  { %v316_v6 = vpop.f32.mrf.mxu1 }
 0x3d4   :  { %v344_v7 = vsel %vm179_vm1, %v343_v48, %v316_v6 }
 0x3d5   :  { %346 = vst [vmem:[#allocation10] sm:$0x3] %v344_v7 }
 0x3d6   :  { %368 = dma.vmem_to_hbm [thread:$0]  %s364_s29, 32, %s366_s10, [#allocation11]  }
 0x3d7   :  { %541 = dma.done.wait [#allocation5], 32  }
 0x3d8   :  { %542 = vsyncadd [#allocation5], 4294967264 }
 0x3d9   :  { %543 = dma.done.wait [#allocation11], 32  }
 0x3da   :  { %544 = vsyncadd [#allocation11], 4294967264 }
 0x3db   :  { %377 = vsyncpa [#allocation4], 1 }
 0x3dc   :  { %378 = vsyncpa [#allocation7], 1 }
 0x3dd   :  { %379 = vsyncpa [#allocation5], 1 }
 0x3de   :  { %380 = vsyncpa [#allocation11], 1 }

</bundles_post_ra>
